<compile_context>
chip_gen: v5e
topology: v5e:2x2
jax: 0.10.0
libtpu: 0.0.40
codegen_flags: <defaults>
</compile_context>

<pallas_src>
import math

import jax
import jax.numpy as jnp
from jax.experimental import pallas as pl
from jax.experimental.pallas import tpu as pltpu

EMB = 20                                     # emb_dim
RRELU_SLOPE = (1.0 / 8.0 + 1.0 / 3.0) / 2.0  # nn.RReLU eval-mode slope


def _round_up(n, m):
    return ((n + m - 1) // m) * m


def _encoder_kernel(x_ref,
                    w1, b1, w2, b2,      # conv1, conv2
                    wh, bh,              # fused heads: [a1 ; c1 ; conv3∘z]
                    wm, bm,              # block-diag [a2 ; c2]
                    wl, bl,              # [a3 ; conv3∘c3]  (yb tail pre-folded)
                    w3, b3,              # conv3 (only the RReLU'd xa path left)
                    o_ref):
    emb = w2.shape[0]

    def dense(w_ref_, h, b_ref_):
        # Channels-first: (Cout, Cin) @ (Cin, tm) on the MXU, f32 accumulation;
        # bias is (Cout, 1) and lane-broadcasts on the VPU.
        return jnp.dot(w_ref_[...], h.astype(w_ref_.dtype),
                       preferred_element_type=jnp.float32) + b_ref_[...]

    x = x_ref[...].astype(jnp.float32)

    # x = relu(conv1(x)); x = relu(conv2(x))
    h = jnp.maximum(dense(w1, x, b1), 0.0)
    h = jnp.maximum(dense(w2, h, b2), 0.0)

    # TODO(synk): xlstm_stack (7-block mLSTM/sLSTM) -> identity passthrough.

    # One fused matmul produces all three branch heads:
    #   rows [0, emb)          -> conv_lst1[0] head (xa)
    #   rows [emb, 2*emb)      -> conv_lst2[0] head (yb)
    #   rows [2*emb, 2*emb+3)  -> z-branch, precomposed AND already multiplied
    #                             by conv3's weight (its final contribution).
    t = dense(wh, h, bh)                                # (2*emb + 3, tm)
    zbc = t[2 * emb:2 * emb + 3, :]

    xy = jnp.maximum(t[0:2 * emb, :], 0.0)              # ReLU after both heads
    xy = jnp.maximum(dense(wm, xy, bm), 0.0)            # conv_lst{1,2}[2] + ReLU
    xy = dense(wl, xy, bl)                              # (emb + 3, tm)

    xa = xy[0:emb, :]
    xa = jnp.where(xa >= 0.0, xa, xa * RRELU_SLOPE)     # RReLU (eval mode)
    ybc = xy[emb:emb + 3, :]                            # conv3(yb) contribution

    # out = conv3(rrelu(xa)) + conv3(yb) + conv3(zb)   (b3 added exactly once)
    o_ref[...] = (dense(w3, xa, b3) + ybc + zbc).astype(o_ref.dtype)


def _pack_params(mats, use_bf16=False):
    """Fuse/precompose the 9 (w, b) conv pairs into the 6 matmuls the kernel runs.

    Weights are stored (Cout, Cin) (torch Conv1d weight squeezed), biases (Cout, 1).
    """
    (w1, b1), (w2, b2) = mats[0], mats[1]
    (a1w, a1b), (a2w, a2b), (a3w, a3b) = mats[2], mats[3], mats[4]
    (c1w, c1b), (c2w, c2b), (c3w, c3b) = mats[5], mats[6], mats[7]
    (w3, b3) = mats[8]
    emb = w2.shape[0]
    f32 = jnp.float32

    # z-branch (original module bug): conv_lst2[-1] applied 6 times. Purely
    # linear -> precompose to one affine map, then fold conv3's weight into it.
    Wz = jnp.eye(emb, dtype=f32)
    bz = jnp.zeros((emb, 1), f32)
    for _ in range(6):
        Wz = c3w @ Wz
        bz = c3w @ bz + c3b
    Wzf = w3 @ Wz                       # (3, emb)
    bzf = w3 @ bz                       # (3, 1); conv3's own bias added in-kernel

    # Fused heads: xa head | yb head | finalized z contribution.
    wh = jnp.concatenate([a1w, c1w, Wzf], axis=0)       # (2*emb + 3, emb)
    bh = jnp.concatenate([a1b, c1b, bzf], axis=0)

    # Middle stage: block-diagonal over the packed [xa ; yb] rows.
    wm = jnp.concatenate(
        [jnp.concatenate([a2w, jnp.zeros((emb, emb), f32)], axis=1),
         jnp.concatenate([jnp.zeros((emb, emb), f32), c2w], axis=1)], axis=0)
    bm = jnp.concatenate([a2b, c2b], axis=0)

    # Last stage: xa rows stay emb-wide (RReLU + conv3 still to come); the yb
    # tail is linear all the way to the output, so conv3 is folded -> 3 rows.
    wl = jnp.concatenate(
        [jnp.concatenate([a3w, jnp.zeros((emb, emb), f32)], axis=1),
         jnp.concatenate([jnp.zeros((3, emb), f32), w3 @ c3w], axis=1)], axis=0)
    bl = jnp.concatenate([a3b, w3 @ c3b], axis=0)       # (emb + 3, 1)

    ws = [w1, w2, wh, wm, wl, w3]
    bs = [b1, b2, bh, bm, bl, b3]
    if use_bf16:
        # bf16 matmul operands (MXU-native on v6e/v7x); biases / elementwise
        # math stay in f32 vregs.
        ws = [w.astype(jnp.bfloat16) for w in ws]

    flat = []
    for w, b in zip(ws, bs):
        flat += [w, b]
    return flat


def model_encoder2_forward(x, mats, *, tm=None, use_bf16=False):
    """x: (B, N, 3) float32. mats: 9 (w, b) pairs, w stored as (Cout, Cin)."""
    B, N, C = x.shape
    assert C == 3
    M = B * N
    if tm is None:
        # 1024 lanes per step keeps compute per grid step well above the
        # ~0.35 us step overhead while leaving multiple steps for megacore
        # sharding on realistic point counts; VMEM use stays tiny.
        tm = min(1024, _round_up(M, 128))
    tm = max(128, (tm // 128) * 128)
    Mp = _round_up(M, tm)

    # Channels-first, lane-dense layout: points on the 128-lane axis.
    x2 = x.reshape(M, C).astype(jnp.float32).T          # (3, M)
    if Mp != M:
        x2 = jnp.pad(x2, ((0, 0), (0, Mp - M)))

    flat = _pack_params(mats, use_bf16=use_bf16)

    def full_spec(arr):
        # Whole-array block, same tile every grid step (stays resident).
        return pl.BlockSpec(arr.shape, lambda i: (0, 0))

    in_specs = [pl.BlockSpec((C, tm), lambda i: (0, i))] + [full_spec(a) for a in flat]
    out_spec = pl.BlockSpec((3, tm), lambda i: (0, i))   # lane-dense stores

    out = pl.pallas_call(
        _encoder_kernel,
        out_shape=jax.ShapeDtypeStruct((3, Mp), jnp.float32),
        grid_spec=pltpu.PrefetchScalarGridSpec(
            num_scalar_prefetch=0,
            grid=(Mp // tm,),
            in_specs=in_specs,
            out_specs=out_spec,
        ),
        compiler_params=pltpu.CompilerParams(dimension_semantics=("parallel",)),
    )(x2, *flat)
    return out[:, :M].T.reshape(B, N, 3)


def _conv1x1_params(key, cin, cout):
    """Deterministic init mimicking PyTorch Conv1d default U(-1/sqrt(fan_in), +).
    Weight stored as (Cout, Cin), bias as (Cout, 1)."""
    kw, kb = jax.random.split(key)
    bound = 1.0 / math.sqrt(cin)
    w = jax.random.uniform(kw, (cout, cin), jnp.float32, -bound, bound)
    b = jax.random.uniform(kb, (cout, 1), jnp.float32, -bound, bound)
    return w, b


def _ref_forward(x, mats):
    """Pure-JAX reference of the same forward semantics (un-fused weights)."""
    def dense(h, wb):
        w, b = wb
        return h @ w.T + b[:, 0]
    h = jax.nn.relu(dense(x, mats[0]))
    h = jax.nn.relu(dense(h, mats[1]))
    xa = jax.nn.relu(dense(h, mats[2]))
    xa = jax.nn.relu(dense(xa, mats[3]))
    xa = dense(xa, mats[4])
    xa = jnp.where(xa >= 0.0, xa, xa * RRELU_SLOPE)
    yb = jax.nn.relu(dense(h, mats[5]))
    yb = jax.nn.relu(dense(yb, mats[6]))
    yb = dense(yb, mats[7])
    zb = h
    for _ in range(6):
        zb = dense(zb, mats[7])
    return dense(xa + yb + zb, mats[8])


if __name__ == "__main__":
    key = jax.random.PRNGKey(0)
    kx, kp = jax.random.split(key)

    B, N = 2, 16          # batch, input_points
    x = jax.random.normal(kx, (B, N, 3), jnp.float32)

    keys = jax.random.split(kp, 9)
    mats = [
        _conv1x1_params(keys[0], 3, EMB),     # conv1
        _conv1x1_params(keys[1], EMB, EMB),   # conv2
        _conv1x1_params(keys[2], EMB, EMB),   # conv_lst1[0]
        _conv1x1_params(keys[3], EMB, EMB),   # conv_lst1[2]
        _conv1x1_params(keys[4], EMB, EMB),   # conv_lst1[4]
        _conv1x1_params(keys[5], EMB, EMB),   # conv_lst2[0]
        _conv1x1_params(keys[6], EMB, EMB),   # conv_lst2[2]
        _conv1x1_params(keys[7], EMB, EMB),   # conv_lst2[4]
        _conv1x1_params(keys[8], EMB, 3),     # conv3
    ]

    # Small run (single grid step, row padding to one 128-lane tile).
    out = jax.block_until_ready(model_encoder2_forward(x, mats))
    assert out.shape == (B, N, 3), out.shape
    ref = _ref_forward(x, mats)
    assert jnp.allclose(out, ref, atol=5e-4, rtol=5e-4), \
        float(jnp.max(jnp.abs(out - ref)))

    # Larger run: multi-step grid (tm=1024), lane padding, megacore axis.
    x_big = jax.random.normal(jax.random.PRNGKey(1), (2, 600, 3), jnp.float32)
    out_big = jax.block_until_ready(model_encoder2_forward(x_big, mats))
    ref_big = _ref_forward(x_big, mats)
    assert jnp.allclose(out_big, ref_big, atol=5e-4, rtol=5e-4), \
        float(jnp.max(jnp.abs(out_big - ref_big)))

    # bf16-operand path (v6e/v7x MXU-native): f32 accumulation, looser tolerance.
    out_bf16 = jax.block_until_ready(
        model_encoder2_forward(x_big, mats, use_bf16=True))
    assert jnp.allclose(out_bf16, ref_big, atol=5e-2, rtol=5e-2), \
        float(jnp.max(jnp.abs(out_bf16 - ref_big)))

    print("KERNEL_OK")
</pallas_src>

<mosaic_0001>
module attributes {stable_mosaic.version = 11 : i64} {
  func.func @_encoder_kernel(%arg0: i32, %arg1: memref<3x128xf32, #tpu.memory_space<vmem>>, %arg2: memref<20x3xf32, #tpu.memory_space<vmem>>, %arg3: memref<20x1xf32, #tpu.memory_space<vmem>>, %arg4: memref<20x20xf32, #tpu.memory_space<vmem>>, %arg5: memref<20x1xf32, #tpu.memory_space<vmem>>, %arg6: memref<43x20xf32, #tpu.memory_space<vmem>>, %arg7: memref<43x1xf32, #tpu.memory_space<vmem>>, %arg8: memref<40x40xf32, #tpu.memory_space<vmem>>, %arg9: memref<40x1xf32, #tpu.memory_space<vmem>>, %arg10: memref<23x40xf32, #tpu.memory_space<vmem>>, %arg11: memref<23x1xf32, #tpu.memory_space<vmem>>, %arg12: memref<3x20xf32, #tpu.memory_space<vmem>>, %arg13: memref<3x1xf32, #tpu.memory_space<vmem>>, %arg14: memref<3x128xf32, #tpu.memory_space<vmem>>) attributes {dimension_semantics = [#tpu.dimension_semantics<parallel>], iteration_bounds = array<i64: 1>, scalar_prefetch = 0 : i64, scratch_operands = 0 : i64, tpu.core_type = #tpu.core_type<tc>, window_params = [{transform_indices = @transform_0, window_bounds = array<i64: 3, 128>}, {pipeline_mode = #tpu.pipeline_mode<synchronous>, transform_indices = @transform_1, window_bounds = array<i64: 20, 3>}, {pipeline_mode = #tpu.pipeline_mode<synchronous>, transform_indices = @transform_2, window_bounds = array<i64: 20, 1>}, {pipeline_mode = #tpu.pipeline_mode<synchronous>, transform_indices = @transform_3, window_bounds = array<i64: 20, 20>}, {pipeline_mode = #tpu.pipeline_mode<synchronous>, transform_indices = @transform_4, window_bounds = array<i64: 20, 1>}, {pipeline_mode = #tpu.pipeline_mode<synchronous>, transform_indices = @transform_5, window_bounds = array<i64: 43, 20>}, {pipeline_mode = #tpu.pipeline_mode<synchronous>, transform_indices = @transform_6, window_bounds = array<i64: 43, 1>}, {pipeline_mode = #tpu.pipeline_mode<synchronous>, transform_indices = @transform_7, window_bounds = array<i64: 40, 40>}, {pipeline_mode = #tpu.pipeline_mode<synchronous>, transform_indices = @transform_8, window_bounds = array<i64: 40, 1>}, {pipeline_mode = #tpu.pipeline_mode<synchronous>, transform_indices = @transform_9, window_bounds = array<i64: 23, 40>}, {pipeline_mode = #tpu.pipeline_mode<synchronous>, transform_indices = @transform_10, window_bounds = array<i64: 23, 1>}, {pipeline_mode = #tpu.pipeline_mode<synchronous>, transform_indices = @transform_11, window_bounds = array<i64: 3, 20>}, {pipeline_mode = #tpu.pipeline_mode<synchronous>, transform_indices = @transform_12, window_bounds = array<i64: 3, 1>}, {transform_indices = @transform_13, window_bounds = array<i64: 3, 128>}]} {
    %c0 = arith.constant 0 : index
    %c0_0 = arith.constant 0 : index
    %0 = vector.load %arg1[%c0, %c0_0] : memref<3x128xf32, #tpu.memory_space<vmem>>, vector<3x128xf32>
    %c0_1 = arith.constant 0 : index
    %c0_2 = arith.constant 0 : index
    %1 = vector.load %arg2[%c0_1, %c0_2] : memref<20x3xf32, #tpu.memory_space<vmem>>, vector<20x3xf32>
    %cst = arith.constant dense<0.000000e+00> : vector<20x128xf32>
    %2 = tpu.matmul %1, %0, %cst {dimension_numbers = #tpu.dot_dimension_numbers<[1], [0], [0], [1], [0, 0, 1, 1], [], []>} : vector<20x3xf32>, vector<3x128xf32>, vector<20x128xf32> -> vector<20x128xf32>
    %c0_3 = arith.constant 0 : index
    %c0_4 = arith.constant 0 : index
    %3 = vector.load %arg3[%c0_3, %c0_4] : memref<20x1xf32, #tpu.memory_space<vmem>>, vector<20x1xf32>
    %4 = vector.broadcast %3 : vector<20x1xf32> to vector<20x128xf32>
    %5 = arith.addf %2, %4 : vector<20x128xf32>
    %cst_5 = arith.constant 0.000000e+00 : f32
    %6 = vector.broadcast %cst_5 : f32 to vector<20x128xf32>
    %7 = arith.maximumf %5, %6 : vector<20x128xf32>
    %c0_6 = arith.constant 0 : index
    %c0_7 = arith.constant 0 : index
    %8 = vector.load %arg4[%c0_6, %c0_7] : memref<20x20xf32, #tpu.memory_space<vmem>>, vector<20x20xf32>
    %cst_8 = arith.constant dense<0.000000e+00> : vector<20x128xf32>
    %9 = tpu.matmul %8, %7, %cst_8 {dimension_numbers = #tpu.dot_dimension_numbers<[1], [0], [0], [1], [0, 0, 1, 1], [], []>} : vector<20x20xf32>, vector<20x128xf32>, vector<20x128xf32> -> vector<20x128xf32>
    %c0_9 = arith.constant 0 : index
    %c0_10 = arith.constant 0 : index
    %10 = vector.load %arg5[%c0_9, %c0_10] : memref<20x1xf32, #tpu.memory_space<vmem>>, vector<20x1xf32>
    %11 = vector.broadcast %10 : vector<20x1xf32> to vector<20x128xf32>
    %12 = arith.addf %9, %11 : vector<20x128xf32>
    %cst_11 = arith.constant 0.000000e+00 : f32
    %13 = vector.broadcast %cst_11 : f32 to vector<20x128xf32>
    %14 = arith.maximumf %12, %13 : vector<20x128xf32>
    %c0_12 = arith.constant 0 : index
    %c0_13 = arith.constant 0 : index
    %15 = vector.load %arg6[%c0_12, %c0_13] : memref<43x20xf32, #tpu.memory_space<vmem>>, vector<43x20xf32>
    %cst_14 = arith.constant dense<0.000000e+00> : vector<43x128xf32>
    %16 = tpu.matmul %15, %14, %cst_14 {dimension_numbers = #tpu.dot_dimension_numbers<[1], [0], [0], [1], [0, 0, 1, 1], [], []>} : vector<43x20xf32>, vector<20x128xf32>, vector<43x128xf32> -> vector<43x128xf32>
    %c0_15 = arith.constant 0 : index
    %c0_16 = arith.constant 0 : index
    %17 = vector.load %arg7[%c0_15, %c0_16] : memref<43x1xf32, #tpu.memory_space<vmem>>, vector<43x1xf32>
    %18 = vector.broadcast %17 : vector<43x1xf32> to vector<43x128xf32>
    %19 = arith.addf %16, %18 : vector<43x128xf32>
    %20 = vector.extract_strided_slice %19 {offsets = [40, 0], sizes = [3, 128], strides = [1, 1]} : vector<43x128xf32> to vector<3x128xf32>
    %21 = vector.extract_strided_slice %19 {offsets = [0, 0], sizes = [40, 128], strides = [1, 1]} : vector<43x128xf32> to vector<40x128xf32>
    %cst_17 = arith.constant 0.000000e+00 : f32
    %22 = vector.broadcast %cst_17 : f32 to vector<40x128xf32>
    %23 = arith.maximumf %21, %22 : vector<40x128xf32>
    %c0_18 = arith.constant 0 : index
    %c0_19 = arith.constant 0 : index
    %24 = vector.load %arg8[%c0_18, %c0_19] : memref<40x40xf32, #tpu.memory_space<vmem>>, vector<40x40xf32>
    %cst_20 = arith.constant dense<0.000000e+00> : vector<40x128xf32>
    %25 = tpu.matmul %24, %23, %cst_20 {dimension_numbers = #tpu.dot_dimension_numbers<[1], [0], [0], [1], [0, 0, 1, 1], [], []>} : vector<40x40xf32>, vector<40x128xf32>, vector<40x128xf32> -> vector<40x128xf32>
    %c0_21 = arith.constant 0 : index
    %c0_22 = arith.constant 0 : index
    %26 = vector.load %arg9[%c0_21, %c0_22] : memref<40x1xf32, #tpu.memory_space<vmem>>, vector<40x1xf32>
    %27 = vector.broadcast %26 : vector<40x1xf32> to vector<40x128xf32>
    %28 = arith.addf %25, %27 : vector<40x128xf32>
    %cst_23 = arith.constant 0.000000e+00 : f32
    %29 = vector.broadcast %cst_23 : f32 to vector<40x128xf32>
    %30 = arith.maximumf %28, %29 : vector<40x128xf32>
    %c0_24 = arith.constant 0 : index
    %c0_25 = arith.constant 0 : index
    %31 = vector.load %arg10[%c0_24, %c0_25] : memref<23x40xf32, #tpu.memory_space<vmem>>, vector<23x40xf32>
    %cst_26 = arith.constant dense<0.000000e+00> : vector<23x128xf32>
    %32 = tpu.matmul %31, %30, %cst_26 {dimension_numbers = #tpu.dot_dimension_numbers<[1], [0], [0], [1], [0, 0, 1, 1], [], []>} : vector<23x40xf32>, vector<40x128xf32>, vector<23x128xf32> -> vector<23x128xf32>
    %c0_27 = arith.constant 0 : index
    %c0_28 = arith.constant 0 : index
    %33 = vector.load %arg11[%c0_27, %c0_28] : memref<23x1xf32, #tpu.memory_space<vmem>>, vector<23x1xf32>
    %34 = vector.broadcast %33 : vector<23x1xf32> to vector<23x128xf32>
    %35 = arith.addf %32, %34 : vector<23x128xf32>
    %36 = vector.extract_strided_slice %35 {offsets = [0, 0], sizes = [20, 128], strides = [1, 1]} : vector<23x128xf32> to vector<20x128xf32>
    %cst_29 = arith.constant 0.000000e+00 : f32
    %37 = vector.broadcast %cst_29 : f32 to vector<20x128xf32>
    %38 = arith.cmpf oge, %36, %37 : vector<20x128xf32>
    %cst_30 = arith.constant 0.229166672 : f32
    %39 = vector.broadcast %cst_30 : f32 to vector<20x128xf32>
    %40 = arith.mulf %36, %39 : vector<20x128xf32>
    %41 = arith.select %38, %36, %40 : vector<20x128xi1>, vector<20x128xf32>
    %42 = vector.extract_strided_slice %35 {offsets = [20, 0], sizes = [3, 128], strides = [1, 1]} : vector<23x128xf32> to vector<3x128xf32>
    %c0_31 = arith.constant 0 : index
    %c0_32 = arith.constant 0 : index
    %43 = vector.load %arg12[%c0_31, %c0_32] : memref<3x20xf32, #tpu.memory_space<vmem>>, vector<3x20xf32>
    %cst_33 = arith.constant dense<0.000000e+00> : vector<3x128xf32>
    %44 = tpu.matmul %43, %41, %cst_33 {dimension_numbers = #tpu.dot_dimension_numbers<[1], [0], [0], [1], [0, 0, 1, 1], [], []>} : vector<3x20xf32>, vector<20x128xf32>, vector<3x128xf32> -> vector<3x128xf32>
    %c0_34 = arith.constant 0 : index
    %c0_35 = arith.constant 0 : index
    %45 = vector.load %arg13[%c0_34, %c0_35] : memref<3x1xf32, #tpu.memory_space<vmem>>, vector<3x1xf32>
    %46 = vector.broadcast %45 : vector<3x1xf32> to vector<3x128xf32>
    %47 = arith.addf %44, %46 : vector<3x128xf32>
    %48 = arith.addf %47, %42 : vector<3x128xf32>
    %49 = arith.addf %48, %20 : vector<3x128xf32>
    %c0_36 = arith.constant 0 : index
    %c0_37 = arith.constant 0 : index
    %50 = vector.load %arg14[%c0_36, %c0_37] : memref<3x128xf32, #tpu.memory_space<vmem>>, vector<3x128xf32>
    tpu.vector_store %arg14[%c0_36, %c0_37], %49 {strides = array<i32>} : memref<3x128xf32, #tpu.memory_space<vmem>>, vector<3x128xf32>,
    return
  }
  func.func @transform_0(%arg0: i32) -> (i32, i32) {
    %c0_i32 = arith.constant 0 : i32
    %c0_i32_0 = arith.constant 0 : i32
    return %c0_i32, %arg0 : i32, i32
  }
  func.func @transform_1(%arg0: i32) -> (i32, i32) {
    %c0_i32 = arith.constant 0 : i32
    %c0_i32_0 = arith.constant 0 : i32
    %c0_i32_1 = arith.constant 0 : i32
    return %c0_i32, %c0_i32_0 : i32, i32
  }
  func.func @transform_2(%arg0: i32) -> (i32, i32) {
    %c0_i32 = arith.constant 0 : i32
    %c0_i32_0 = arith.constant 0 : i32
    %c0_i32_1 = arith.constant 0 : i32
    return %c0_i32, %c0_i32_0 : i32, i32
  }
  func.func @transform_3(%arg0: i32) -> (i32, i32) {
    %c0_i32 = arith.constant 0 : i32
    %c0_i32_0 = arith.constant 0 : i32
    %c0_i32_1 = arith.constant 0 : i32
    return %c0_i32, %c0_i32_0 : i32, i32
  }
  func.func @transform_4(%arg0: i32) -> (i32, i32) {
    %c0_i32 = arith.constant 0 : i32
    %c0_i32_0 = arith.constant 0 : i32
    %c0_i32_1 = arith.constant 0 : i32
    return %c0_i32, %c0_i32_0 : i32, i32
  }
  func.func @transform_5(%arg0: i32) -> (i32, i32) {
    %c0_i32 = arith.constant 0 : i32
    %c0_i32_0 = arith.constant 0 : i32
    %c0_i32_1 = arith.constant 0 : i32
    return %c0_i32, %c0_i32_0 : i32, i32
  }
  func.func @transform_6(%arg0: i32) -> (i32, i32) {
    %c0_i32 = arith.constant 0 : i32
    %c0_i32_0 = arith.constant 0 : i32
    %c0_i32_1 = arith.constant 0 : i32
    return %c0_i32, %c0_i32_0 : i32, i32
  }
  func.func @transform_7(%arg0: i32) -> (i32, i32) {
    %c0_i32 = arith.constant 0 : i32
    %c0_i32_0 = arith.constant 0 : i32
    %c0_i32_1 = arith.constant 0 : i32
    return %c0_i32, %c0_i32_0 : i32, i32
  }
  func.func @transform_8(%arg0: i32) -> (i32, i32) {
    %c0_i32 = arith.constant 0 : i32
    %c0_i32_0 = arith.constant 0 : i32
    %c0_i32_1 = arith.constant 0 : i32
    return %c0_i32, %c0_i32_0 : i32, i32
  }
  func.func @transform_9(%arg0: i32) -> (i32, i32) {
    %c0_i32 = arith.constant 0 : i32
    %c0_i32_0 = arith.constant 0 : i32
    %c0_i32_1 = arith.constant 0 : i32
    return %c0_i32, %c0_i32_0 : i32, i32
  }
  func.func @transform_10(%arg0: i32) -> (i32, i32) {
    %c0_i32 = arith.constant 0 : i32
    %c0_i32_0 = arith.constant 0 : i32
    %c0_i32_1 = arith.constant 0 : i32
    return %c0_i32, %c0_i32_0 : i32, i32
  }
  func.func @transform_11(%arg0: i32) -> (i32, i32) {
    %c0_i32 = arith.constant 0 : i32
    %c0_i32_0 = arith.constant 0 : i32
    %c0_i32_1 = arith.constant 0 : i32
    return %c0_i32, %c0_i32_0 : i32, i32
  }
  func.func @transform_12(%arg0: i32) -> (i32, i32) {
    %c0_i32 = arith.constant 0 : i32
    %c0_i32_0 = arith.constant 0 : i32
    %c0_i32_1 = arith.constant 0 : i32
    return %c0_i32, %c0_i32_0 : i32, i32
  }
  func.func @transform_13(%arg0: i32) -> (i32, i32) {
    %c0_i32 = arith.constant 0 : i32
    %c0_i32_0 = arith.constant 0 : i32
    return %c0_i32, %arg0 : i32, i32
  }
}

</mosaic_0001>

<bundles_post_ra>
// kernel: tpu_custom_call.1
= control target key start
LH: loop header
LB: loop body
LE: loop exit
PB: predicated region body
PF: predicated region fallthrough
CT: control target
= control target key end

     0   :  { %vm77_vm0 = vcmask 1042432   ;;  %v541_v2 = vmov 0   ;;  %vm67_vm1 = vcmask 23552   ;;  %s769_s0 = inlined_call_operand.vmem [shape: f32[3,128], index: 0, kind: input, shape index: {}]   ;;  %s770_s1 = inlined_call_operand.vmem [shape: f32[20,3], index: 1, kind: input, shape index: {}]   ;;  %s771_s2 = inlined_call_operand.vmem [shape: f32[20,1], index: 2, kind: input, shape index: {}]   ;;  %s772_s3 = inlined_call_operand.vmem [shape: f32[20,20], index: 3, kind: input, shape index: {}]   ;;  %s773_s4 = inlined_call_operand.vmem [shape: f32[20,1], index: 4, kind: input, shape index: {}]   ;;  %s774_s5 = inlined_call_operand.vmem [shape: f32[43,20], index: 5, kind: input, shape index: {}]   ;;  %s775_s6 = inlined_call_operand.vmem [shape: f32[43,1], index: 6, kind: input, shape index: {}]   ;;  %s776_s7 = inlined_call_operand.vmem [shape: f32[40,40], index: 7, kind: input, shape index: {}]   ;;  %s777_s8 = inlined_call_operand.vmem [shape: f32[40,1], index: 8, kind: input, shape index: {}]   ;;  %s778_s9 = inlined_call_operand.vmem [shape: f32[23,40], index: 9, kind: input, shape index: {}]   ;;  %s779_s10 = inlined_call_operand.vmem [shape: f32[23,1], index: 10, kind: input, shape index: {}]   ;;  %s780_s11 = inlined_call_operand.vmem [shape: f32[3,20], index: 11, kind: input, shape index: {}]   ;;  %s781_s12 = inlined_call_operand.vmem [shape: f32[3,1], index: 12, kind: input, shape index: {}]   ;;  %s782_s13 = inlined_call_operand.hbm [shape: f32[3,128], index: 13, kind: output, shape index: {}]  }
   0x1   :  { %v45_v0 = vld [vmem:[%s769_s0] sm:$0x7]  ;;  %v51_v1 = vld [vmem:[%s771_s2 + $0x10] sm:$0xf]  ;;  %513 = vset.pattern.permute.xlu1 %v541_v2  ;;  %512 = vset.pattern.permute.xlu0 %v541_v2 }
   0x2   :  { %v49_v3 = vld [vmem:[%s771_s2] sm:$0xff]  ;;  %485 = vmatpush.msk.msra.mxu0 %vm77_vm0, %v45_v0  ;;  %64 = vperm.xlu0 %512, %v51_v1  }
   0x3   :  { %v46_v4 = vld [vmem:[%s770_s1] sm:$0xff]  ;;  %54 = vperm.xlu1 %513, %v49_v3   ;;  %514 = vset.pattern.permute.xlu2 %v541_v2 }
   0x4   :  { %486 = vmatmul.msk.f32.vlgmr.msra.gmra.mxu0 %vm67_vm1, %v46_v4 }
   0x5   :  { %18 = vsyncpa [#allocation3], 0  ;;  %v50_v5 = vld [vmem:[%s771_s2 + $0x8] sm:$0xff]  ;;  %v115_v6 = vld [vmem:[%s773_s4 + $0x10] sm:$0xf]  ;;  %vm141_vm2 = vcmask 1043456  }
   0x6   :  { %v47_v7 = vld [vmem:[%s770_s1 + $0x8] sm:$0xff]  ;;  %v184_v8 = vld [vmem:[%s775_s6 + $0x20] sm:$0xff]  ;;  %v183_v9 = vld [vmem:[%s775_s6 + $0x18] sm:$0xff]  ;;  %vm131_vm3 = vcmask 162816   ;;  %vm312_vm4 = vcmask 326656   ;;  %s476_s22 = sshll.u32 %s782_s13, 4  ;;  %s477_s22 = int_to_ptr.hbm [resolvable:$true] %s476_s22 }
   0x7   :  { %v48_v10 = vld [vmem:[%s770_s1 + $0x10] sm:$0xf]  ;;  %v181_v11 = vld [vmem:[%s775_s6 + $0x8] sm:$0xff]  ;;  %v180_v12 = vld [vmem:[%s775_s6] sm:$0xff] }
   0x8   :  { %v285_v13 = vld [vmem:[%s777_s8 + $0x18] sm:$0xff]  ;;  %v284_v14 = vld [vmem:[%s777_s8 + $0x10] sm:$0xff]  ;;  %v282_v15 = vld [vmem:[%s777_s8] sm:$0xff] }
   0x9   :  { %v370_v16 = vld [vmem:[%s779_s10 + $0x10] sm:$0x7f]  ;;  %v368_v17 = vld [vmem:[%s779_s10] sm:$0xff]  ;;  %v114_v19 = vld [vmem:[%s773_s4 + $0x8] sm:$0xff] }
   0xa   :  { %59 = vperm.xlu0 %512, %v50_v5   ;;  %v431_v18 = vld [vmem:[%s781_s12] sm:$0x7]  ;;  %123 = vperm.xlu2 %514, %v114_v19   ;;  %v182_v22 = vld [vmem:[%s775_s6 + $0x10] sm:$0xff]  ;;  %v283_v34 = vld [vmem:[%s777_s8 + $0x8] sm:$0xff] }
   0xb   :  { %128 = vperm.xlu1 %513, %v115_v6   ;;  %v113_v20 = vld [vmem:[%s773_s4] sm:$0xff]  ;;  %v369_v37 = vld [vmem:[%s779_s10 + $0x8] sm:$0xff]  ;;  %v112_v40 = vld [vmem:[%s772_s3 + $0x10] sm:$0xf] }
   0xc   :  { %487 = vmatmul.msk.f32.gmra.mxu0 %vm67_vm1, %v47_v7  ;;  %v286_v25 = vld [vmem:[%s777_s8 + $0x20] sm:$0xff]  ;;  %v111_v38 = vld [vmem:[%s772_s3 + $0x8] sm:$0xff]  ;;  %v176_v55 = vld [vmem:[%s774_s5 + $0x10] sm:$0xff] }
   0xd   :  { %v110_v36 = vld [vmem:[%s772_s3] sm:$0xff]  ;;  %v185_v39 = vld [vmem:[%s775_s6 + $0x28] sm:$0x7]  ;;  %v177_v56 = vld [vmem:[%s774_s5 + $0x18] sm:$0xff]  ;;  %s542_s3 = smov [#allocation2]  }
   0xe   :  { %v174_v53 = vld [vmem:[%s774_s5] sm:$0xff]  ;;  %v175_v54 = vld [vmem:[%s774_s5 + $0x8] sm:$0xff]  ;;  %s474_s10 = sshll.u32 %s542_s3, 4  ;;  %s475_s10 = int_to_ptr.vmem [resolvable:$true] %s474_s10 }
   0xf   :  { %v178_v57 = vld [vmem:[%s774_s5 + $0x20] sm:$0xff]  ;;  %v179_v58 = vld [vmem:[%s774_s5 + $0x28] sm:$0x7] }
  0x10   :  { %v281_v19 = vld [vmem:[%s776_s7 + $0x20] sm:$0xff] }
  0x12   :  { %208 = vperm.xlu0 %512, %v184_v8   ;;  %118 = vperm.xlu2 %514, %v113_v20  }
  0x13   :  { %203 = vperm.xlu1 %513, %v183_v9  }
  0x14   :  { %488 = vmatmul.msk.f32.gmra.mxu0 %vm67_vm1, %v48_v10 }
  0x1a   :  { %193 = vperm.xlu0 %512, %v181_v11   ;;  %198 = vperm.xlu2 %514, %v182_v22  }
  0x1b   :  { %188 = vperm.xlu1 %513, %v180_v12  }
  0x22   :  { %304 = vperm.xlu0 %512, %v285_v13   ;;  %309 = vperm.xlu2 %514, %v286_v25  }
  0x23   :  { %299 = vperm.xlu1 %513, %v284_v14  }
  0x2a   :  { %289 = vperm.xlu0 %512, %v282_v15   ;;  %294 = vperm.xlu2 %514, %v283_v34   ;;  %v277_v15 = vld [vmem:[%s776_s7] sm:$0xff] }
  0x2b   :  { %383 = vperm.xlu1 %513, %v370_v16   ;;  %v278_v16 = vld [vmem:[%s776_s7 + $0x8] sm:$0xff] }
  0x32   :  { %373 = vperm.xlu0 %512, %v368_v17   ;;  %378 = vperm.xlu2 %514, %v369_v37   ;;  %v279_v17 = vld [vmem:[%s776_s7 + $0x10] sm:$0xff] }
  0x33   :  { %434 = vperm.xlu1 %513, %v431_v18   ;;  %v280_v18 = vld [vmem:[%s776_s7 + $0x18] sm:$0xff] }
  0x3a   :  { %213 = vperm.xlu2 %514, %v185_v39  }
  0x64   :  { %v124_v42 = vpop.permute.xlu2 %123 }
  0x6c   :  { %v119_v48 = vpop.permute.xlu2 %118 }
  0x74   :  { %v65_v23 = vpop.permute.xlu0 %64  ;;  %v199_v4 = vpop.permute.xlu2 %198 }
  0x75   :  { %v55_v30 = vpop.permute.xlu1 %54 }
  0x7c   :  { %v60_v26 = vpop.permute.xlu0 %59 }
  0x7d   :  { %v129_v44 = vpop.permute.xlu1 %128 }
  0x81   :  { %v98_v21 = vpop.f32.mrf.mxu0 }
  0x82   :  { %v99_v31 = vadd.f32 %v98_v21, %v55_v30 }
  0x84   :  { %v107_v35 = vmax.f32 %v99_v31, 0.0  ;;  %v209_v63 = vpop.permute.xlu0 %208 }
  0x85   :  { %v204_v0 = vpop.permute.xlu1 %203 }
  0x89   :  { %v101_v24 = vpop.f32.mrf.mxu0 }
  0x8a   :  { %v102_v28 = vadd.f32 %v101_v24, %v60_v26  ;;  %v310_v24 = vpop.permute.xlu2 %309 }
  0x8c   :  { %v108_v33 = vmax.f32 %v102_v28, 0.0  ;;  %v194_v7 = vpop.permute.xlu0 %193 }
  0x8d   :  { %v189_v10 = vpop.permute.xlu1 %188 }
  0x91   :  { %v104_v27 = vpop.f32.mrf.mxu0 }
  0x92   :  { %v105_v29 = vadd.f32 %v104_v27, %v65_v23 }
  0x94   :  { %v109_v32 = vmax.f32 %v105_v29, 0.0  ;;  %v305_v25 = vpop.permute.xlu0 %304 }
  0x95   :  { %v300_v29 = vpop.permute.xlu1 %299 }
  0x96   :  { %489 = vmatpush.msk.msra.mxu1 %vm141_vm2, %v109_v32  ;;  %v295_v32 = vpop.permute.xlu2 %294 }
  0x98   :  { %159 = vmatpush.msra.mxu1 %v108_v33 }
  0x9a   :  { %160 = vmatpush.msra.mxu1 %v107_v35 }
  0x9b   :  { %490 = vmatmul.msk.f32.vlgmr.msra.gmra.mxu1 %vm131_vm3, %v110_v36 }
  0x9c   :  { %v290_v35 = vpop.permute.xlu0 %289 }
  0xa3   :  { %491 = vmatmul.msk.f32.gmra.mxu1 %vm131_vm3, %v111_v38 }
  0xab   :  { %492 = vmatmul.msk.f32.gmra.mxu1 %vm131_vm3, %v112_v40  ;;  %v365_v40 = vld [vmem:[%s778_s9] sm:$0xff] }
 0x118   :  { %v162_v41 = vpop.f32.mrf.mxu1 }
 0x119   :  { %v163_v49 = vadd.f32 %v162_v41, %v119_v48  ;;  %v366_v41 = vld [vmem:[%s778_s9 + $0x8] sm:$0xff]  ;;  %v374_v48 = vpop.permute.xlu0 %373 }
 0x11b   :  { %v171_v52 = vmax.f32 %v163_v49, 0.0 }
 0x120   :  { %v165_v43 = vpop.f32.mrf.mxu1 }
 0x121   :  { %v166_v46 = vadd.f32 %v165_v43, %v124_v42  ;;  %v367_v42 = vld [vmem:[%s778_s9 + $0x10] sm:$0x7f] }
 0x123   :  { %v172_v51 = vmax.f32 %v166_v46, 0.0  ;;  %v384_v46 = vpop.permute.xlu1 %383 }
 0x128   :  { %v168_v45 = vpop.f32.mrf.mxu1 }
 0x129   :  { %v169_v47 = vadd.f32 %v168_v45, %v129_v44  ;;  %v379_v45 = vpop.permute.xlu2 %378 }
 0x12b   :  { %v173_v50 = vmax.f32 %v169_v47, 0.0 }
 0x12d   :  { %493 = vmatpush.msk.msra.mxu2 %vm141_vm2, %v173_v50 }
 0x12f   :  { %251 = vmatpush.msra.mxu2 %v172_v51 }
 0x131   :  { %252 = vmatpush.msra.mxu2 %v171_v52 }
 0x132   :  { %494 = vmatmul.msk.f32.vlgmr.msra.gmra.mxu2 %vm131_vm3, %v174_v53 }
 0x13a   :  { %495 = vmatmul.msk.f32.gmra.mxu2 %vm131_vm3, %v175_v54 }
 0x142   :  { %496 = vmatmul.msk.f32.gmra.mxu2 %vm131_vm3, %v176_v55 }
 0x14a   :  { %497 = vmatmul.msk.f32.gmra.mxu2 %vm131_vm3, %v177_v56 }
 0x152   :  { %498 = vmatmul.msk.f32.gmra.mxu2 %vm131_vm3, %v178_v57  ;;  %v430_v57 = vld [vmem:[%s780_s11] sm:$0x7] }
 0x15a   :  { %499 = vmatmul.msk.f32.gmra.mxu2 %vm131_vm3, %v179_v58 }
 0x1b5   :  { %v254_v59 = vpop.f32.mrf.mxu2 }
 0x1b6   :  { %v255_v11 = vadd.f32 %v254_v59, %v189_v10  ;;  %v435_v59 = vpop.permute.xlu1 %434 }
 0x1b8   :  { %v272_v14 = vmax.f32 %v255_v11, 0.0 }
 0x1bd   :  { %v257_v60 = vpop.f32.mrf.mxu2 }
 0x1be   :  { %v258_v8 = vadd.f32 %v257_v60, %v194_v7 }
 0x1c0   :  { %v273_v13 = vmax.f32 %v258_v8, 0.0 }
 0x1c5   :  { %v260_v61 = vpop.f32.mrf.mxu2 }
 0x1c6   :  { %v261_v5 = vadd.f32 %v260_v61, %v199_v4 }
 0x1c8   :  { %v274_v12 = vmax.f32 %v261_v5, 0.0 }
 0x1cd   :  { %v263_v62 = vpop.f32.mrf.mxu2 }
 0x1ce   :  { %v264_v2 = vadd.f32 %v263_v62, %v204_v0  ;;  %v214_v0 = vpop.permute.xlu2 %213 }
 0x1d0   :  { %v275_v9 = vmax.f32 %v264_v2, 0.0 }
 0x1d5   :  { %v266_v1 = vpop.f32.mrf.mxu2 }
 0x1d6   :  { %v267_v3 = vadd.f32 %v266_v1, %v209_v63 }
 0x1d8   :  { %v276_v6 = vmax.f32 %v267_v3, 0.0 }
 0x1da   :  { %339 = vmatpush.msra.mxu3 %v276_v6 }
 0x1dc   :  { %340 = vmatpush.msra.mxu3 %v275_v9 }
 0x1dd   :  { %v269_v60 = vpop.f32.mrf.mxu2 }
 0x1de   :  { %341 = vmatpush.msra.mxu3 %v274_v12  ;;  %v270_v1 = vadd.f32 %v269_v60, %v214_v0 }
 0x1e0   :  { %342 = vmatpush.msra.mxu3 %v273_v13 }
 0x1e2   :  { %343 = vmatpush.msra.mxu3 %v272_v14 }
 0x1e3   :  { %500 = vmatmul.msk.f32.vlgmr.msra.gmra.mxu3 %vm312_vm4, %v277_v15 }
 0x1eb   :  { %501 = vmatmul.msk.f32.gmra.mxu3 %vm312_vm4, %v278_v16 }
 0x1f3   :  { %502 = vmatmul.msk.f32.gmra.mxu3 %vm312_vm4, %v279_v17 }
 0x1fb   :  { %503 = vmatmul.msk.f32.gmra.mxu3 %vm312_vm4, %v280_v18 }
 0x203   :  { %504 = vmatmul.msk.f32.gmra.mxu3 %vm312_vm4, %v281_v19 }
 0x266   :  { %v345_v20 = vpop.f32.mrf.mxu3 }
 0x267   :  { %v346_v36 = vadd.f32 %v345_v20, %v290_v35 }
 0x269   :  { %v360_v39 = vmax.f32 %v346_v36, 0.0 }
 0x26e   :  { %v348_v21 = vpop.f32.mrf.mxu3 }
 0x26f   :  { %v349_v33 = vadd.f32 %v348_v21, %v295_v32 }
 0x271   :  { %v361_v38 = vmax.f32 %v349_v33, 0.0 }
 0x276   :  { %v351_v22 = vpop.f32.mrf.mxu3 }
 0x277   :  { %v352_v30 = vadd.f32 %v351_v22, %v300_v29 }
 0x279   :  { %v362_v37 = vmax.f32 %v352_v30, 0.0 }
 0x27e   :  { %v354_v23 = vpop.f32.mrf.mxu3 }
 0x27f   :  { %v355_v27 = vadd.f32 %v354_v23, %v305_v25 }
 0x281   :  { %v363_v34 = vmax.f32 %v355_v27, 0.0 }
 0x286   :  { %v357_v26 = vpop.f32.mrf.mxu3 }
 0x287   :  { %v358_v28 = vadd.f32 %v357_v26, %v310_v24 }
 0x289   :  { %v364_v31 = vmax.f32 %v358_v28, 0.0 }
 0x28b   :  { %406 = vmatpush.msrb.mxu0 %v364_v31 }
 0x28d   :  { %407 = vmatpush.msrb.mxu0 %v363_v34 }
 0x28f   :  { %408 = vmatpush.msrb.mxu0 %v362_v37 }
 0x291   :  { %409 = vmatpush.msrb.mxu0 %v361_v38 }
 0x293   :  { %410 = vmatpush.msrb.mxu0 %v360_v39 }
 0x294   :  { %505 = vmatmul.msk.f32.vlgmr.msrb.gmra.mxu0 %vm312_vm4, %v365_v40 }
 0x29c   :  { %506 = vmatmul.msk.f32.gmra.mxu0 %vm312_vm4, %v366_v41 }
 0x2a4   :  { %507 = vmatmul.msk.f32.gmra.mxu0 %vm312_vm4, %v367_v42 }
 0x311   :  { %v412_v43 = vpop.f32.mrf.mxu0 }
 0x312   :  { %v413_v50 = vadd.f32 %v412_v43, %v374_v48 }
 0x314   :  { %v424_v55 = vmul.f32 0.22916667, %v413_v50  ;;  %vm421_vm7 = vcmp.ge.f32.partialorder %v413_v50, 0.0 }
 0x316   :  { %v427_v58 = vsel %vm421_vm7, %v413_v50, %v424_v55 }
 0x319   :  { %v415_v44 = vpop.f32.mrf.mxu0 }
 0x31a   :  { %v416_v47 = vadd.f32 %v415_v44, %v379_v45 }
 0x31c   :  { %v425_v53 = vmul.f32 0.22916667, %v416_v47  ;;  %vm422_vm6 = vcmp.ge.f32.partialorder %v416_v47, 0.0 }
 0x31e   :  { %v428_v56 = vsel %vm422_vm6, %v416_v47, %v425_v53 }
 0x321   :  { %v418_v49 = vpop.f32.mrf.mxu0 }
 0x322   :  { %v419_v51 = vadd.f32 %v418_v49, %v384_v46 }
 0x324   :  { %vm423_vm5 = vcmp.ge.f32.partialorder %v419_v51, 0.0  ;;  %v426_v52 = vmul.f32 0.22916667, %v419_v51  ;;  %v464_v63 = vrot.slane %v419_v51, 4 }
 0x326   :  { %v429_v54 = vsel %vm423_vm5, %v419_v51, %v426_v52 }
 0x327   :  { %508 = vmatpush.msk.msrb.mxu1 %vm141_vm2, %v429_v54 }
 0x329   :  { %457 = vmatpush.msrb.mxu1 %v428_v56 }
 0x32b   :  { %458 = vmatpush.msrb.mxu1 %v427_v58 }
 0x32c   :  { %509 = vmatmul.msk.f32.vlgmr.msrb.gmra.mxu1 %vm131_vm3, %v430_v57 }
 0x3a9   :  { %v460_v61 = vpop.f32.mrf.mxu1 }
 0x3aa   :  { %v461_v62 = vadd.f32 %v460_v61, %v435_v59 }
 0x3ac   :  { %v466_v2 = vadd.f32 %v464_v63, %v461_v62 }
 0x3ae   :  { %v467_v3 = vadd.f32 %v466_v2, %v270_v1 }
 0x3b0   :  { %468 = vst [vmem:[#allocation2] sm:$0x7] %v467_v3 }
 0x3b1   :  { %479 = dma.vmem_to_hbm [thread:$0]  %s475_s10, 64, %s477_s22, [#allocation3]  }
 0x3b2   :  { %539 = dma.done.wait [#allocation3], 64  }
 0x3b3   :  { %540 = vsyncadd [#allocation3], 4294967232 }
 0x3b4   :  { %484 = vsyncpa [#allocation3], 1 }

</bundles_post_ra>
